<compile_context>
chip_gen: v5e
topology: v5e:2x2
jax: 0.10.0
libtpu: 0.0.40
codegen_flags: <defaults>
</compile_context>

<pallas_src>
import jax
import jax.numpy as jnp
from jax.experimental import pallas as pl
from jax.experimental.pallas import tpu as pltpu


# ----------------------------- Pallas kernel ---------------------------------
def _st_block_fused_kernel(x_ref, a_ref,
                           w1_ref, b1_ref, w2_ref, b2_ref, w3_ref, b3_ref,
                           wc_ref, bc_ref, out_ref):
    """Fused 3-layer GCN stack + Conv1d(k=3, pad=1), all carries at once.

    Activations are kept as a lane-dense [N, carry*feat] slab.  GCN weights are
    block-diagonal (kron(I_carry, W)) and the Conv1d is a block-banded matrix,
    so every step is a plain MXU matmul.
    """
    a = a_ref[...]          # [N, N] dense symmetric-normalized adjacency
    h = x_ref[...]          # [N, carry*f_in]

    def gcn_layer(h, w_ref, b_ref):
        # per-carry Linear (block-diagonal weight) -> one matmul
        h = jnp.dot(h, w_ref[...], preferred_element_type=jnp.float32)
        # node aggregation for all carries at once
        h = jnp.dot(a, h, preferred_element_type=jnp.float32)
        # bias (tiled over carry) + ReLU
        return jnp.maximum(h + b_ref[...], 0.0)

    h = gcn_layer(h, w1_ref, b1_ref)
    h = gcn_layer(h, w2_ref, b2_ref)
    h = gcn_layer(h, w3_ref, b3_ref)

    # Conv1d over the carry axis as one block-banded matmul (+ bias)
    out = jnp.dot(h, wc_ref[...], preferred_element_type=jnp.float32) + bc_ref[...]
    out_ref[...] = out.astype(out_ref.dtype)


# ------------------------------- glue -----------------------------------------
def gcn_norm_dense(edge_index, num_nodes):
    """Dense D^{-1/2} (A + I) D^{-1/2}, matching PyG GCNConv defaults.

    Note: edges are deduplicated by the scatter-set; PyG counts duplicate edges
    in the degree, so pass a duplicate-free edge_index (as we do here).
    """
    src, dst = edge_index[0], edge_index[1]
    a = jnp.zeros((num_nodes, num_nodes), jnp.float32)
    a = a.at[dst, src].set(1.0)
    idx = jnp.arange(num_nodes)
    a = a.at[idx, idx].set(1.0)                      # add self loops
    deg = a.sum(axis=1)
    dinv = jnp.where(deg > 0.0, jax.lax.rsqrt(deg), 0.0)
    return dinv[:, None] * a * dinv[None, :]


def init_params(key, f_in, f_out):
    """Deterministic synthetic parameters (shapes dictated by STBlock.__init__)."""
    h1 = (f_in * 3 + f_out * 1) // 4    # hidden_sizes[0], i = 1
    h2 = (f_in * 0 + f_out * 4) // 4    # hidden_sizes[1], i = 4  (== f_out)
    ks = jax.random.split(key, 5)

    def glorot(k, shape):
        lim = (6.0 / (shape[0] + shape[1])) ** 0.5
        return jax.random.uniform(k, shape, jnp.float32, -lim, lim)

    w1 = glorot(ks[0], (f_in, h1)); b1 = jnp.zeros((1, h1), jnp.float32)
    w2 = glorot(ks[1], (h1, h2));   b2 = jnp.zeros((1, h2), jnp.float32)
    w3 = glorot(ks[2], (h2, f_out)); b3 = jnp.zeros((1, f_out), jnp.float32)
    # nn.Conv1d(f_out, f_out, 3): weight [out, in, k], bias [out]
    lim = 1.0 / (f_out * 3) ** 0.5
    wc = jax.random.uniform(ks[3], (f_out, f_out, 3), jnp.float32, -lim, lim)
    bc = jax.random.uniform(ks[4], (1, f_out), jnp.float32, -lim, lim)
    return (w1, b1, w2, b2, w3, b3, wc, bc)


def prepare_params(params, carry):
    """Fold the carry axis into the weights (hoisted out of the forward path).

    GCN Linear -> block-diagonal kron(I_carry, W); Conv1d(k=3, pad=1) over carry
    -> block-banded matrix; biases tiled over carry.
    """
    w1, b1, w2, b2, w3, b3, wc, bc = params
    eye_c = jnp.eye(carry, dtype=jnp.float32)
    w1_bd = jnp.kron(eye_c, w1)                      # [carry*f_in, carry*h1]
    w2_bd = jnp.kron(eye_c, w2)                      # [carry*h1,  carry*h2]
    w3_bd = jnp.kron(eye_c, w3)                      # [carry*h2,  carry*f_out]
    b1_t = jnp.tile(b1, (1, carry))
    b2_t = jnp.tile(b2, (1, carry))
    b3_t = jnp.tile(b3, (1, carry))

    f_out = wc.shape[0]
    # out[n, c*f_out + o] = bc[o] + sum_{k,i} wc[o, i, k] * sp[n, (c+k-1)*f_out + i]
    # (zero padding handled by the band structure: missing shifts contribute 0).
    wc_band = jnp.zeros((carry * f_out, carry * f_out), jnp.float32)
    for k in range(3):
        shift = jnp.eye(carry, k=1 - k, dtype=jnp.float32)
        wc_band = wc_band + jnp.kron(shift, wc[:, :, k].T)
    bc_t = jnp.tile(bc, (1, carry))
    return (w1_bd, b1_t, w2_bd, b2_t, w3_bd, b3_t, wc_band, bc_t)


@jax.jit
def st_block_forward(temporal_features, a_norm, prepared):
    """temporal_features: [N, carry(=f_in), f_feat(=t_in)] -> [N, f_out, t_in]."""
    w1_bd, b1_t, w2_bd, b2_t, w3_bd, b3_t, wc_band, bc_t = prepared
    n, carry, f_feat = temporal_features.shape
    assert carry * f_feat == w1_bd.shape[0], \
        "reference PyTorch code requires t_in == f_in"
    f_out = bc_t.shape[1] // carry

    # TODO(synk): F.dropout(x) in ConvGraphNet (p=0.5, training default) is
    # treated as identity here; PyTorch's dropout RNG stream is not reproducible.

    # lane-dense activation slab [N, carry*f_feat]
    x_flat = temporal_features.reshape(n, carry * f_feat)

    # Single fused, un-gridded kernel: everything stays resident in VMEM.
    # TODO(synk): for large node counts, tile a_norm over node rows (and cast to
    # bf16) instead of holding the dense N x N matrix as one VMEM block.
    out_flat = pl.pallas_call(
        _st_block_fused_kernel,
        out_shape=jax.ShapeDtypeStruct((n, carry * f_out), jnp.float32),
        in_specs=[pl.BlockSpec(memory_space=pltpu.MemorySpace.VMEM)] * 10,
        out_specs=pl.BlockSpec(memory_space=pltpu.MemorySpace.VMEM),
    )(x_flat, a_norm, w1_bd, b1_t, w2_bd, b2_t, w3_bd, b3_t, wc_band, bc_t)

    # [N, carry*f_out] -> [N, f_out, t_in(=carry)] (cheap wrapper-side layout op)
    return jnp.transpose(out_flat.reshape(n, carry, f_out), (0, 2, 1))


# --------------------------- pure-JAX reference --------------------------------
def st_block_reference(x, edge_index, params):
    w1, b1, w2, b2, w3, b3, wc, bc = params
    n = x.shape[0]
    a = gcn_norm_dense(edge_index, n)
    sp = x
    for w, b in ((w1, b1), (w2, b2), (w3, b3)):
        sp = jnp.einsum('ncf,fj->ncj', sp, w)
        sp = jnp.einsum('nu,ucj->ncj', a, sp)
        sp = jnp.maximum(sp + b, 0.0)
    inp = jnp.transpose(sp, (0, 2, 1))                         # [N, f_out, carry]
    out = jax.lax.conv_general_dilated(
        inp, wc, window_strides=(1,), padding=[(1, 1)],
        dimension_numbers=('NCH', 'OIH', 'NCH'))
    return out + bc[0][None, :, None]


if __name__ == "__main__":
    node_num, f_in, f_out = 16, 8, 4
    t_in = f_in   # required by the reference PyTorch code (see layout comment)

    key = jax.random.PRNGKey(0)
    k_x, k_p = jax.random.split(key)
    x = jax.random.normal(k_x, (node_num, f_in, t_in), jnp.float32)

    # deterministic ring graph, both directions (no duplicate edges)
    src = jnp.arange(node_num, dtype=jnp.int32)
    dst = (src + 1) % node_num
    edge_index = jnp.stack(
        [jnp.concatenate([src, dst]), jnp.concatenate([dst, src])], axis=0)

    params = init_params(k_p, f_in, f_out)

    # loop-invariant precomputation, hoisted out of the forward path
    a_norm = gcn_norm_dense(edge_index, node_num)
    prepared = prepare_params(params, carry=f_in)

    out = st_block_forward(x, a_norm, prepared)
    out = jax.block_until_ready(out)
    assert out.shape == (node_num, f_out, t_in), out.shape

    ref = st_block_reference(x, edge_index, params)
    if not bool(jnp.allclose(out, ref, atol=1e-4, rtol=1e-4)):
        raise AssertionError("Pallas STBlock does not match JAX reference")

    print("KERNEL_OK")
</pallas_src>

<mosaic_0001>
module attributes {stable_mosaic.version = 11 : i64} {
  func.func @_st_block_fused_kernel(%arg0: memref<16x64xf32, #tpu.memory_space<vmem>>, %arg1: memref<16x16xf32, #tpu.memory_space<vmem>>, %arg2: memref<64x56xf32, #tpu.memory_space<vmem>>, %arg3: memref<1x56xf32, #tpu.memory_space<vmem>>, %arg4: memref<56x32xf32, #tpu.memory_space<vmem>>, %arg5: memref<1x32xf32, #tpu.memory_space<vmem>>, %arg6: memref<32x32xf32, #tpu.memory_space<vmem>>, %arg7: memref<1x32xf32, #tpu.memory_space<vmem>>, %arg8: memref<32x32xf32, #tpu.memory_space<vmem>>, %arg9: memref<1x32xf32, #tpu.memory_space<vmem>>, %arg10: memref<16x32xf32, #tpu.memory_space<vmem>>) attributes {dimension_semantics = [], scalar_prefetch = 0 : i64, scratch_operands = 0 : i64, tpu.core_type = #tpu.core_type<tc>} {
    %c0 = arith.constant 0 : index
    %c0_0 = arith.constant 0 : index
    %0 = vector.load %arg1[%c0, %c0_0] : memref<16x16xf32, #tpu.memory_space<vmem>>, vector<16x16xf32>
    %c0_1 = arith.constant 0 : index
    %c0_2 = arith.constant 0 : index
    %1 = vector.load %arg0[%c0_1, %c0_2] : memref<16x64xf32, #tpu.memory_space<vmem>>, vector<16x64xf32>
    %c0_3 = arith.constant 0 : index
    %c0_4 = arith.constant 0 : index
    %2 = vector.load %arg2[%c0_3, %c0_4] : memref<64x56xf32, #tpu.memory_space<vmem>>, vector<64x56xf32>
    %cst = arith.constant dense<0.000000e+00> : vector<16x56xf32>
    %3 = tpu.matmul %1, %2, %cst {dimension_numbers = #tpu.dot_dimension_numbers<[1], [0], [0], [1], [0, 0, 1, 1], [], []>} : vector<16x64xf32>, vector<64x56xf32>, vector<16x56xf32> -> vector<16x56xf32>
    %cst_5 = arith.constant dense<0.000000e+00> : vector<16x56xf32>
    %4 = tpu.matmul %0, %3, %cst_5 {dimension_numbers = #tpu.dot_dimension_numbers<[1], [0], [0], [1], [0, 0, 1, 1], [], []>} : vector<16x16xf32>, vector<16x56xf32>, vector<16x56xf32> -> vector<16x56xf32>
    %c0_6 = arith.constant 0 : index
    %c0_7 = arith.constant 0 : index
    %5 = vector.load %arg3[%c0_6, %c0_7] : memref<1x56xf32, #tpu.memory_space<vmem>>, vector<1x56xf32>
    %6 = vector.broadcast %5 : vector<1x56xf32> to vector<16x56xf32>
    %7 = arith.addf %4, %6 : vector<16x56xf32>
    %cst_8 = arith.constant 0.000000e+00 : f32
    %8 = vector.broadcast %cst_8 : f32 to vector<16x56xf32>
    %9 = arith.maximumf %7, %8 : vector<16x56xf32>
    %c0_9 = arith.constant 0 : index
    %c0_10 = arith.constant 0 : index
    %10 = vector.load %arg4[%c0_9, %c0_10] : memref<56x32xf32, #tpu.memory_space<vmem>>, vector<56x32xf32>
    %cst_11 = arith.constant dense<0.000000e+00> : vector<16x32xf32>
    %11 = tpu.matmul %9, %10, %cst_11 {dimension_numbers = #tpu.dot_dimension_numbers<[1], [0], [0], [1], [0, 0, 1, 1], [], []>} : vector<16x56xf32>, vector<56x32xf32>, vector<16x32xf32> -> vector<16x32xf32>
    %cst_12 = arith.constant dense<0.000000e+00> : vector<16x32xf32>
    %12 = tpu.matmul %0, %11, %cst_12 {dimension_numbers = #tpu.dot_dimension_numbers<[1], [0], [0], [1], [0, 0, 1, 1], [], []>} : vector<16x16xf32>, vector<16x32xf32>, vector<16x32xf32> -> vector<16x32xf32>
    %c0_13 = arith.constant 0 : index
    %c0_14 = arith.constant 0 : index
    %13 = vector.load %arg5[%c0_13, %c0_14] : memref<1x32xf32, #tpu.memory_space<vmem>>, vector<1x32xf32>
    %14 = vector.broadcast %13 : vector<1x32xf32> to vector<16x32xf32>
    %15 = arith.addf %12, %14 : vector<16x32xf32>
    %cst_15 = arith.constant 0.000000e+00 : f32
    %16 = vector.broadcast %cst_15 : f32 to vector<16x32xf32>
    %17 = arith.maximumf %15, %16 : vector<16x32xf32>
    %c0_16 = arith.constant 0 : index
    %c0_17 = arith.constant 0 : index
    %18 = vector.load %arg6[%c0_16, %c0_17] : memref<32x32xf32, #tpu.memory_space<vmem>>, vector<32x32xf32>
    %cst_18 = arith.constant dense<0.000000e+00> : vector<16x32xf32>
    %19 = tpu.matmul %17, %18, %cst_18 {dimension_numbers = #tpu.dot_dimension_numbers<[1], [0], [0], [1], [0, 0, 1, 1], [], []>} : vector<16x32xf32>, vector<32x32xf32>, vector<16x32xf32> -> vector<16x32xf32>
    %cst_19 = arith.constant dense<0.000000e+00> : vector<16x32xf32>
    %20 = tpu.matmul %0, %19, %cst_19 {dimension_numbers = #tpu.dot_dimension_numbers<[1], [0], [0], [1], [0, 0, 1, 1], [], []>} : vector<16x16xf32>, vector<16x32xf32>, vector<16x32xf32> -> vector<16x32xf32>
    %c0_20 = arith.constant 0 : index
    %c0_21 = arith.constant 0 : index
    %21 = vector.load %arg7[%c0_20, %c0_21] : memref<1x32xf32, #tpu.memory_space<vmem>>, vector<1x32xf32>
    %22 = vector.broadcast %21 : vector<1x32xf32> to vector<16x32xf32>
    %23 = arith.addf %20, %22 : vector<16x32xf32>
    %cst_22 = arith.constant 0.000000e+00 : f32
    %24 = vector.broadcast %cst_22 : f32 to vector<16x32xf32>
    %25 = arith.maximumf %23, %24 : vector<16x32xf32>
    %c0_23 = arith.constant 0 : index
    %c0_24 = arith.constant 0 : index
    %26 = vector.load %arg8[%c0_23, %c0_24] : memref<32x32xf32, #tpu.memory_space<vmem>>, vector<32x32xf32>
    %cst_25 = arith.constant dense<0.000000e+00> : vector<16x32xf32>
    %27 = tpu.matmul %25, %26, %cst_25 {dimension_numbers = #tpu.dot_dimension_numbers<[1], [0], [0], [1], [0, 0, 1, 1], [], []>} : vector<16x32xf32>, vector<32x32xf32>, vector<16x32xf32> -> vector<16x32xf32>
    %c0_26 = arith.constant 0 : index
    %c0_27 = arith.constant 0 : index
    %28 = vector.load %arg9[%c0_26, %c0_27] : memref<1x32xf32, #tpu.memory_space<vmem>>, vector<1x32xf32>
    %29 = vector.broadcast %28 : vector<1x32xf32> to vector<16x32xf32>
    %30 = arith.addf %27, %29 : vector<16x32xf32>
    %c0_28 = arith.constant 0 : index
    %c0_29 = arith.constant 0 : index
    %31 = vector.load %arg10[%c0_28, %c0_29] : memref<16x32xf32, #tpu.memory_space<vmem>>, vector<16x32xf32>
    tpu.vector_store %arg10[%c0_28, %c0_29], %30 {strides = array<i32>} : memref<16x32xf32, #tpu.memory_space<vmem>>, vector<16x32xf32>,
    return
  }
}

</mosaic_0001>

<bundles_post_ra>
// kernel: st_block_forward.1
= control target key start
LH: loop header
LB: loop body
LE: loop exit
PB: predicated region body
PF: predicated region fallthrough
CT: control target
= control target key end

     0   :  { %vm47_vm0 = vcmask 523264   ;;  %vm81_vm1 = vcmask 130048   ;;  %vm120_vm2 = vcmask 457728   ;;  %vm183_vm3 = vcmask 261120   ;;  %s476_s2 = inlined_call_operand.vmem [shape: f32[64,56], index: 2, kind: input, shape index: {}]   ;;  %s477_s0 = inlined_call_operand.vmem [shape: f32[16,64], index: 0, kind: input, shape index: {}]   ;;  %s478_s3 = inlined_call_operand.vmem [shape: f32[1,56], index: 3, kind: input, shape index: {}]   ;;  %s479_s4 = inlined_call_operand.vmem [shape: f32[56,32], index: 4, kind: input, shape index: {}]   ;;  %s480_s1 = inlined_call_operand.vmem [shape: f32[16,16], index: 1, kind: input, shape index: {}]   ;;  %s481_s5 = inlined_call_operand.vmem [shape: f32[1,32], index: 5, kind: input, shape index: {}]   ;;  %s482_s6 = inlined_call_operand.vmem [shape: f32[32,32], index: 6, kind: input, shape index: {}]   ;;  %s483_s7 = inlined_call_operand.vmem [shape: f32[1,32], index: 7, kind: input, shape index: {}]   ;;  %s484_s8 = inlined_call_operand.vmem [shape: f32[32,32], index: 8, kind: input, shape index: {}]   ;;  %s485_s9 = inlined_call_operand.vmem [shape: f32[1,32], index: 9, kind: input, shape index: {}]   ;;  %s486_s10 = inlined_call_operand.vmem [shape: f32[16,32], index: 10, kind: output, shape index: {}]  }
   0x1   :  { %v46_v0 = vld [vmem:[%s476_s2 + $0x38] sm:$0xff]  ;;  %v45_v1 = vld [vmem:[%s476_s2 + $0x30] sm:$0xff]  ;;  %v44_v2 = vld [vmem:[%s476_s2 + $0x28] sm:$0xff] }
   0x2   :  { %62 = vmatpush.msra.mxu0 %v46_v0  ;;  %v43_v3 = vld [vmem:[%s476_s2 + $0x20] sm:$0xff]  ;;  %v42_v4 = vld [vmem:[%s476_s2 + $0x18] sm:$0xff]  ;;  %v41_v5 = vld [vmem:[%s476_s2 + $0x10] sm:$0xff] }
   0x3   :  { %v40_v6 = vld [vmem:[%s476_s2 + $0x8] sm:$0xff]  ;;  %v39_v7 = vld [vmem:[%s476_s2] sm:$0xff]  ;;  %v119_v10 = vld [vmem:[%s479_s4 + $0x30] sm:$0xff] }
   0x4   :  { %63 = vmatpush.msra.mxu0 %v45_v1  ;;  %v37_v8 = vld [vmem:[%s477_s0] sm:$0xff]  ;;  %v38_v9 = vld [vmem:[%s477_s0 + $0x8] sm:$0xff]  ;;  %299 = vmatpush.msra.mxu2 %v119_v10  ;;  %v116_v13 = vld [vmem:[%s479_s4 + $0x18] sm:$0xff] }
   0x5   :  { %v118_v11 = vld [vmem:[%s479_s4 + $0x28] sm:$0xff]  ;;  %v117_v12 = vld [vmem:[%s479_s4 + $0x20] sm:$0xff]  ;;  %v115_v18 = vld [vmem:[%s479_s4 + $0x10] sm:$0xff] }
   0x6   :  { %64 = vmatpush.msra.mxu0 %v44_v2  ;;  %300 = vmatpush.msra.mxu2 %v118_v11  ;;  %v35_v16 = vld [vmem:[%s480_s1] sm:$0xff]  ;;  %v36_v17 = vld [vmem:[%s480_s1 + $0x8] sm:$0xff]  ;;  %v182_v28 = vld [vmem:[%s482_s6 + $0x18] sm:$0xff] }
   0x7   :  { %v114_v19 = vld [vmem:[%s479_s4 + $0x8] sm:$0xff]  ;;  %v113_v20 = vld [vmem:[%s479_s4] sm:$0xff]  ;;  %v181_v31 = vld [vmem:[%s482_s6 + $0x10] sm:$0xff] }
   0x8   :  { %65 = vmatpush.msra.mxu0 %v43_v3  ;;  %301 = vmatpush.msra.mxu2 %v117_v12  ;;  %v306_v21 = vld [vmem:[%s478_s3] ss:$0 sm:$0xff]  ;;  %v180_v32 = vld [vmem:[%s482_s6 + $0x8] sm:$0xff]  ;;  %v245_v41 = vld [vmem:[%s484_s8 + $0x18] sm:$0xff] }
   0x9   :  { %v179_v33 = vld [vmem:[%s482_s6] sm:$0xff]  ;;  %v244_v42 = vld [vmem:[%s484_s8 + $0x10] sm:$0xff]  ;;  %v243_v45 = vld [vmem:[%s484_s8 + $0x8] sm:$0xff] }
   0xa   :  { %66 = vmatpush.msra.mxu0 %v42_v4  ;;  %302 = vmatpush.msra.mxu2 %v116_v13  ;;  %v307_v34 = vld [vmem:[%s481_s5] ss:$0 sm:$0xff] }
   0xb   :  { %v242_v46 = vld [vmem:[%s484_s8] sm:$0xff] }
   0xc   :  { %67 = vmatpush.msra.mxu0 %v41_v5  ;;  %303 = vmatpush.msra.mxu2 %v115_v18  ;;  %v308_v47 = vld [vmem:[%s483_s7] ss:$0 sm:$0xff] }
   0xd   :  { %v309_v54 = vld [vmem:[%s485_s9] ss:$0 sm:$0xff] }
   0xe   :  { %68 = vmatpush.msra.mxu0 %v40_v6  ;;  %304 = vmatpush.msra.mxu2 %v114_v19 }
  0x10   :  { %69 = vmatpush.msra.mxu0 %v39_v7  ;;  %305 = vmatpush.msra.mxu2 %v113_v20 }
  0x11   :  { %285 = vmatmul.msk.f32.vlgmr.msra.gmra.mxu0 %vm47_vm0, %v37_v8 }
  0x12   :  { %136 = vmatpush.msrb.mxu0 %v119_v10  ;;  %268 = vmatpush.msrb.mxu2 %v245_v41 }
  0x14   :  { %137 = vmatpush.msrb.mxu0 %v118_v11  ;;  %269 = vmatpush.msrb.mxu2 %v244_v42 }
  0x16   :  { %138 = vmatpush.msrb.mxu0 %v117_v12  ;;  %270 = vmatpush.msrb.mxu2 %v243_v45 }
  0x18   :  { %139 = vmatpush.msrb.mxu0 %v116_v13  ;;  %271 = vmatpush.msrb.mxu2 %v242_v46 }
  0x19   :  { %286 = vmatmul.msk.f32.gmra.mxu0 %vm47_vm0, %v38_v9 }
  0x1a   :  { %140 = vmatpush.msrb.mxu0 %v115_v18 }
  0x1c   :  { %141 = vmatpush.msrb.mxu0 %v114_v19 }
  0x1e   :  { %142 = vmatpush.msrb.mxu0 %v113_v20 }
  0x8e   :  { %v71_v14 = vpop.f32.mrf.mxu0 }
  0x96   :  { %v74_v15 = vpop.f32.mrf.mxu0 }
  0x97   :  { %102 = vmatpush.msra.mxu1 %v74_v15 }
  0x99   :  { %103 = vmatpush.msra.mxu1 %v71_v14 }
  0x9a   :  { %287 = vmatmul.msk.f32.vlgmr.msra.gmra.mxu1 %vm81_vm1, %v35_v16 }
  0x9b   :  { %202 = vmatpush.msrb.mxu1 %v182_v28 }
  0x9d   :  { %203 = vmatpush.msrb.mxu1 %v181_v31 }
  0x9f   :  { %204 = vmatpush.msrb.mxu1 %v180_v32 }
  0xa1   :  { %205 = vmatpush.msrb.mxu1 %v179_v33 }
  0xa2   :  { %288 = vmatmul.msk.f32.gmra.mxu1 %vm81_vm1, %v36_v17 }
 0x117   :  { %v105_v22 = vpop.f32.mrf.mxu1 }
 0x118   :  { %v106_v23 = vadd.f32 %v306_v21, %v105_v22 }
 0x11a   :  { %v111_v24 = vmax.f32 %v106_v23, 0.0 }
 0x11c   :  { %289 = vmatmul.msk.f32.vlgmr.msrb.gmra.mxu0 %vm120_vm2, %v111_v24 }
 0x11f   :  { %v108_v25 = vpop.f32.mrf.mxu1 }
 0x120   :  { %v109_v26 = vadd.f32 %v306_v21, %v108_v25 }
 0x122   :  { %v112_v27 = vmax.f32 %v109_v26, 0.0 }
 0x124   :  { %290 = vmatmul.msk.f32.vlgmr.msra.gmra.mxu2 %vm120_vm2, %v112_v27 }
 0x199   :  { %v144_v30 = vpop.f32.mrf.mxu0 }
 0x1a7   :  { %v147_v29 = vpop.f32.mrf.mxu2 }
 0x1a8   :  { %168 = vmatpush.msra.mxu3 %v147_v29 }
 0x1aa   :  { %169 = vmatpush.msra.mxu3 %v144_v30 }
 0x1ab   :  { %291 = vmatmul.msk.f32.vlgmr.msra.gmra.mxu3 %vm81_vm1, %v35_v16 }
 0x1b3   :  { %292 = vmatmul.msk.f32.gmra.mxu3 %vm81_vm1, %v36_v17 }
 0x22e   :  { %v171_v35 = vpop.f32.mrf.mxu3 }
 0x22f   :  { %v172_v36 = vadd.f32 %v307_v34, %v171_v35 }
 0x231   :  { %v177_v37 = vmax.f32 %v172_v36, 0.0 }
 0x233   :  { %293 = vmatmul.msk.f32.vlgmr.msrb.gmra.mxu1 %vm183_vm3, %v177_v37 }
 0x236   :  { %v174_v38 = vpop.f32.mrf.mxu3 }
 0x237   :  { %v175_v39 = vadd.f32 %v307_v34, %v174_v38 }
 0x239   :  { %v178_v40 = vmax.f32 %v175_v39, 0.0 }
 0x23b   :  { %294 = vmatmul.msk.f32.gmra.mxu1 %vm183_vm3, %v178_v40 }
 0x2b0   :  { %v207_v43 = vpop.f32.mrf.mxu1 }
 0x2b8   :  { %v210_v44 = vpop.f32.mrf.mxu1 }
 0x2b9   :  { %231 = vmatpush.msrb.mxu3 %v210_v44 }
 0x2bb   :  { %232 = vmatpush.msrb.mxu3 %v207_v43 }
 0x2bc   :  { %295 = vmatmul.msk.f32.vlgmr.msrb.gmra.mxu3 %vm81_vm1, %v35_v16 }
 0x2c4   :  { %296 = vmatmul.msk.f32.gmra.mxu3 %vm81_vm1, %v36_v17 }
 0x33f   :  { %v234_v48 = vpop.f32.mrf.mxu3 }
 0x340   :  { %v235_v49 = vadd.f32 %v308_v47, %v234_v48 }
 0x342   :  { %v240_v50 = vmax.f32 %v235_v49, 0.0 }
 0x344   :  { %297 = vmatmul.msk.f32.vlgmr.msrb.gmra.mxu2 %vm183_vm3, %v240_v50 }
 0x347   :  { %v237_v51 = vpop.f32.mrf.mxu3 }
 0x348   :  { %v238_v52 = vadd.f32 %v308_v47, %v237_v51 }
 0x34a   :  { %v241_v53 = vmax.f32 %v238_v52, 0.0 }
 0x34c   :  { %298 = vmatmul.msk.f32.gmra.mxu2 %vm183_vm3, %v241_v53 }
 0x3c7   :  { %v273_v55 = vpop.f32.mrf.mxu2 }
 0x3c8   :  { %v274_v56 = vadd.f32 %v309_v54, %v273_v55 }
 0x3ca   :  { %279 = vst.msk [vmem:[%s486_s10] sm:$0xff] %vm183_vm3, %v274_v56 }
 0x3cf   :  { %v276_v57 = vpop.f32.mrf.mxu2 }
 0x3d0   :  { %v277_v58 = vadd.f32 %v309_v54, %v276_v57 }
 0x3d2   :  { %280 = vst.msk [vmem:[%s486_s10 + $0x8] sm:$0xff] %vm183_vm3, %v277_v58 }

</bundles_post_ra>
